<compile_context>
chip_gen: v7x
topology: tpu7x:2x2x1
jax: 0.10.0
libtpu: 0.0.40
codegen_flags: <defaults>
</compile_context>

<pallas_src>
import functools

import jax
import jax.numpy as jnp
from jax.experimental import pallas as pl
from jax.experimental.pallas import tpu as pltpu


def _aff_fused_kernel(x1_ref, x2_ref, w1a_ref, w1b_ref, b1_ref, w2_ref,
                      b2_ref, w3_ref, b3_ref, out_ref, sum_ref, gate_ref,
                      *res_refs, tp, p_true, inv_p, needs_mask, resident,
                      mm_dtype):
    ph = pl.program_id(1)   # 0 = gate/reduction phase, 1 = apply phase
    t = pl.program_id(2)    # lane tile index

    @pl.when(ph == 0)
    def _gate_phase():
        @pl.when(t == 0)
        def _():
            sum_ref[...] = jnp.zeros_like(sum_ref)

        x1 = x1_ref[0]                                   # (C, TP)
        x2 = x2_ref[0]                                   # (C, TP)

        if resident:
            x1_res, x2_res = res_refs
            off = pl.multiple_of(t * tp, 128)
            x1_res[:, pl.ds(off, tp)] = x1
            x2_res[:, pl.ds(off, tp)] = x2

        # conv1x1_a on the (virtual) concat: split weight == channel concat.
        x1m = x1.astype(mm_dtype)
        x2m = x2.astype(mm_dtype)
        h = (jnp.dot(w1a_ref[...], x1m, preferred_element_type=jnp.float32)
             + jnp.dot(w1b_ref[...], x2m, preferred_element_type=jnp.float32)
             + b1_ref[...])
        h = jnp.maximum(h, 0.0)                          # ReLU, (Hc, TP) f32

        # conv1x1_b + Sigmoid
        s = jax.nn.sigmoid(
            jnp.dot(w2_ref[...], h.astype(mm_dtype),
                    preferred_element_type=jnp.float32)
            + b2_ref[...])                               # (2C, TP) f32

        if needs_mask:
            # padded pixels have nonzero sigmoid -> exclude from pooled mean
            col = t * tp + jax.lax.broadcasted_iota(jnp.int32, (1, tp), 1)
            s = jnp.where(col < p_true, s, 0.0)

        sum_ref[...] += jnp.sum(s, axis=-1, keepdims=True)   # (2C, 1)

        @pl.when(t == pl.num_programs(2) - 1)
        def _():
            pooled = sum_ref[...] * inv_p                    # true-P mean
            g = (jnp.dot(w3_ref[...], pooled,
                         preferred_element_type=jnp.float32) + b3_ref[...])
            gate_ref[...] = jax.nn.sigmoid(g)                # (C, 1)

    @pl.when(ph == 1)
    def _apply_phase():
        g = gate_ref[...]                                    # (C, 1), f32
        if resident:
            x1_res, x2_res = res_refs
            off = pl.multiple_of(t * tp, 128)
            x1t = x1_res[:, pl.ds(off, tp)]
            x2t = x2_res[:, pl.ds(off, tp)]
        else:
            x1t = x1_ref[0]
            x2t = x2_ref[0]
        out_ref[0] = (g * x1t + x2t).astype(out_ref.dtype)


def _round_up(x, m):
    return (x + m - 1) // m * m


def _vmem_capacity_bytes():
    """Physical VMEM per core (64 MiB v7x, 128 MiB v5e/v6e); safe fallback."""
    try:
        cap = int(pltpu.get_tpu_info().vmem_capacity_bytes)
        if cap > 0:
            return cap
    except Exception:
        pass
    return 64 << 20


def aff_forward(x1_nchw, x2_nchw, params):
    """AFF forward. x1, x2: (N, C, H, W). Returns (N, C, H, W)."""
    N, C, H, W = x1_nchw.shape
    assert x2_nchw.shape == x1_nchw.shape
    P = H * W
    C2 = 2 * C
    Hc = params["w1"].shape[1]

    in_dt = x1_nchw.dtype
    out_dt = in_dt
    ib = jnp.dtype(in_dt).itemsize
    ob = jnp.dtype(out_dt).itemsize

    # bf16 matmul inputs only pay off once the channel dots bind (large C).
    use_bf16_mm = (C >= 64) or (in_dt == jnp.bfloat16)
    mm_dt = jnp.bfloat16 if use_bf16_mm else jnp.float32

    # Generation-aware VMEM budget with headroom (~48 MiB v7x, ~96 MiB v5e/v6e).
    cap = _vmem_capacity_bytes()
    budget = (cap * 3) // 4

    weights_bytes = (2 * Hc * C + C2 * Hc + C * C2 + Hc + C2 + C) * 4 * 2
    fixed_bytes = weights_bytes + (2 << 20)

    def tile_bytes(tp):
        x_stream = 4 * C * tp * ib            # x1, x2, double-buffered
        out_buf = 2 * C * tp * ob             # out, double-buffered
        inter = (Hc + 4 * C) * tp * 4         # h, s, casts (generous)
        return x_stream + out_buf + inter

    p128 = _round_up(P, 128)

    # Residency: keep the whole per-batch x1/x2 in VMEM so phase 1 never
    # re-reads HBM (cuts total HBM traffic from ~5 to 3 array passes).
    resident = (2 * C * p128 * ib + tile_bytes(128) + fixed_bytes) <= budget

    # Largest 128-multiple lane tile fitting the remaining budget.
    avail = budget - fixed_bytes - (2 * C * p128 * ib if resident else 0)
    per_lane = 4 * C * ib + 2 * C * ob + (Hc + 4 * C) * 4
    tp = max(128, (avail // per_lane) // 128 * 128)
    tp = min(tp, p128)

    n_tiles = -(-P // tp)
    Pp = n_tiles * tp
    if resident and (2 * C * Pp * ib + tile_bytes(tp) + fixed_bytes) > budget:
        resident = False
    needs_mask = (Pp != P)

    # NCHW -> (N, C, P) is a pure reshape; pad P up to the tile boundary.
    x1 = x1_nchw.reshape(N, C, P)
    x2 = x2_nchw.reshape(N, C, P)
    if Pp != P:
        pad = ((0, 0), (0, 0), (0, Pp - P))
        x1 = jnp.pad(x1, pad)
        x2 = jnp.pad(x2, pad)

    # Weights in "W @ x" orientation (channels on sublanes, P on lanes);
    # biases as columns so the adds broadcast over lanes.
    w1a = params["w1"][:C].T.astype(mm_dt)        # (Hc, C)
    w1b = params["w1"][C:].T.astype(mm_dt)        # (Hc, C)
    b1 = params["b1"].reshape(Hc, 1).astype(jnp.float32)
    w2 = params["w2"].T.astype(mm_dt)             # (2C, Hc)
    b2 = params["b2"].reshape(C2, 1).astype(jnp.float32)
    w3 = params["w3"].T.astype(jnp.float32)       # (C, 2C)
    b3 = params["b3"].reshape(C, 1).astype(jnp.float32)

    if resident:
        # phase 1 pins the x blocks to tile 0 -> no HBM re-read of x1/x2.
        x_map = lambda n, ph, t: (n, 0, t * (1 - ph))
    else:
        x_map = lambda n, ph, t: (n, 0, t)
    # phase 0 parks the output block on tile 0 (never written -> no writeback
    # until phase 1 overwrites it), phase 1 walks the tiles lane-dense.
    out_map = lambda n, ph, t: (n, 0, t * ph)

    x_spec = pl.BlockSpec((1, C, tp), x_map)
    out_spec = pl.BlockSpec((1, C, tp), out_map)
    w_spec = lambda shape: pl.BlockSpec(shape, lambda n, ph, t: (0, 0))

    scratch = [pltpu.VMEM((C2, 1), jnp.float32),   # running pixel sum
               pltpu.VMEM((C, 1), jnp.float32)]    # sigmoid gate (stays in VMEM)
    if resident:
        scratch += [pltpu.VMEM((C, Pp), in_dt), pltpu.VMEM((C, Pp), in_dt)]

    kernel = functools.partial(
        _aff_fused_kernel, tp=tp, p_true=P, inv_p=1.0 / P,
        needs_mask=needs_mask, resident=resident, mm_dtype=mm_dt)

    out = pl.pallas_call(
        kernel,
        out_shape=jax.ShapeDtypeStruct((N, C, Pp), out_dt),
        grid_spec=pltpu.PrefetchScalarGridSpec(
            num_scalar_prefetch=0,
            grid=(N, 2, n_tiles),
            in_specs=[x_spec, x_spec,
                      w_spec((Hc, C)), w_spec((Hc, C)), w_spec((Hc, 1)),
                      w_spec((C2, Hc)), w_spec((C2, 1)),
                      w_spec((C, C2)), w_spec((C, 1))],
            out_specs=out_spec,
            scratch_shapes=scratch),
        compiler_params=pltpu.CompilerParams(
            # TODO(synk): for N==1 on v7x, split the P reduction across the two
            # TensorCores (leading size-2 parallel axis + partial-sum combine).
            dimension_semantics=("parallel", "arbitrary", "arbitrary"),
            vmem_limit_bytes=int(min(cap, budget + (8 << 20)))),
    )(x1, x2, w1a, w1b, b1, w2, b2, w3, b3)

    if Pp != P:
        out = out[:, :, :P]
    return out.reshape(N, C, H, W)


def init_aff_params(key, in_ch, reduction):
    """Deterministic synthetic parameters (shapes match nn.Conv2d 1x1 weights)."""
    in_ch1 = in_ch * 2
    hidden = in_ch * 2 // reduction
    assert hidden >= 1, "pick in_ch/reduction so hidden_ch >= 1"
    ks = jax.random.split(key, 6)
    # stored as (in, out) matrices + (1, out) biases
    return {
        "w1": 0.1 * jax.random.normal(ks[0], (in_ch1, hidden), jnp.float32),
        "b1": 0.1 * jax.random.normal(ks[1], (1, hidden), jnp.float32),
        "w2": 0.1 * jax.random.normal(ks[2], (hidden, in_ch1), jnp.float32),
        "b2": 0.1 * jax.random.normal(ks[3], (1, in_ch1), jnp.float32),
        "w3": 0.1 * jax.random.normal(ks[4], (in_ch1, in_ch), jnp.float32),
        "b3": 0.1 * jax.random.normal(ks[5], (1, in_ch), jnp.float32),
    }


def aff_reference(x1, x2, p):
    """Pure-JAX reference mirroring the PyTorch forward (NCHW)."""
    x12 = jnp.concatenate([x1, x2], axis=1)                      # (N, 2C, H, W)
    h = jnp.einsum("nchw,cd->ndhw", x12, p["w1"]) + p["b1"][0][None, :, None, None]
    h = jnp.maximum(h, 0.0)
    s = jnp.einsum("ndhw,dc->nchw", h, p["w2"]) + p["b2"][0][None, :, None, None]
    s = jax.nn.sigmoid(s)
    y = jnp.einsum("nchw,cd->ndhw", s, p["w3"]) + p["b3"][0][None, :, None, None]
    g = jax.nn.sigmoid(jnp.mean(y, axis=(2, 3), keepdims=True))  # (N, C, 1, 1)
    return g * x1 + x2


if __name__ == "__main__":
    key = jax.random.PRNGKey(0)
    in_ch, reduction = 8, 4          # hidden_ch = 2*8 // 4 = 4
    N = 2
    k1, k2, kp, k3, k4 = jax.random.split(key, 5)
    params = init_aff_params(kp, in_ch, reduction)

    # Case 1: 128-aligned spatial size (resident, unmasked path).
    H, W = 16, 16
    x1 = jax.random.normal(k1, (N, in_ch, H, W), jnp.float32)
    x2 = jax.random.normal(k2, (N, in_ch, H, W), jnp.float32)
    out = aff_forward(x1, x2, params)
    jax.block_until_ready(out)
    ref = aff_reference(x1, x2, params)
    assert out.shape == (N, in_ch, H, W)
    assert jnp.allclose(out, ref, atol=1e-4, rtol=1e-4), \
        float(jnp.max(jnp.abs(out - ref)))

    # Case 2: non-128-multiple spatial size (exercises padded + masked pooling).
    H2, W2 = 10, 10
    x1b = jax.random.normal(k3, (N, in_ch, H2, W2), jnp.float32)
    x2b = jax.random.normal(k4, (N, in_ch, H2, W2), jnp.float32)
    outb = aff_forward(x1b, x2b, params)
    jax.block_until_ready(outb)
    refb = aff_reference(x1b, x2b, params)
    assert outb.shape == (N, in_ch, H2, W2)
    assert jnp.allclose(outb, refb, atol=1e-4, rtol=1e-4), \
        float(jnp.max(jnp.abs(outb - refb)))

    print("KERNEL_OK")
</pallas_src>

<mosaic_0001>
module attributes {stable_mosaic.version = 11 : i64} {
  func.func @_aff_fused_kernel(%arg0: i32, %arg1: i32, %arg2: i32, %arg3: memref<1x8x256xf32, #tpu.memory_space<vmem>>, %arg4: memref<1x8x256xf32, #tpu.memory_space<vmem>>, %arg5: memref<4x8xf32, #tpu.memory_space<vmem>>, %arg6: memref<4x8xf32, #tpu.memory_space<vmem>>, %arg7: memref<4x1xf32, #tpu.memory_space<vmem>>, %arg8: memref<16x4xf32, #tpu.memory_space<vmem>>, %arg9: memref<16x1xf32, #tpu.memory_space<vmem>>, %arg10: memref<8x16xf32, #tpu.memory_space<vmem>>, %arg11: memref<8x1xf32, #tpu.memory_space<vmem>>, %arg12: memref<1x8x256xf32, #tpu.memory_space<vmem>>, %arg13: memref<16x1xf32, #tpu.memory_space<vmem>>, %arg14: memref<8x1xf32, #tpu.memory_space<vmem>>, %arg15: memref<8x256xf32, #tpu.memory_space<vmem>>, %arg16: memref<8x256xf32, #tpu.memory_space<vmem>>) attributes {dimension_semantics = [#tpu.dimension_semantics<parallel>, #tpu.dimension_semantics<arbitrary>, #tpu.dimension_semantics<arbitrary>], iteration_bounds = array<i64: 2, 2, 1>, scalar_prefetch = 0 : i64, scratch_operands = 4 : i64, tpu.core_type = #tpu.core_type<tc>, window_params = [{transform_indices = @transform_0, window_bounds = array<i64: 1, 8, 256>}, {transform_indices = @transform_1, window_bounds = array<i64: 1, 8, 256>}, {pipeline_mode = #tpu.pipeline_mode<synchronous>, transform_indices = @transform_2, window_bounds = array<i64: 4, 8>}, {pipeline_mode = #tpu.pipeline_mode<synchronous>, transform_indices = @transform_3, window_bounds = array<i64: 4, 8>}, {pipeline_mode = #tpu.pipeline_mode<synchronous>, transform_indices = @transform_4, window_bounds = array<i64: 4, 1>}, {pipeline_mode = #tpu.pipeline_mode<synchronous>, transform_indices = @transform_5, window_bounds = array<i64: 16, 4>}, {pipeline_mode = #tpu.pipeline_mode<synchronous>, transform_indices = @transform_6, window_bounds = array<i64: 16, 1>}, {pipeline_mode = #tpu.pipeline_mode<synchronous>, transform_indices = @transform_7, window_bounds = array<i64: 8, 16>}, {pipeline_mode = #tpu.pipeline_mode<synchronous>, transform_indices = @transform_8, window_bounds = array<i64: 8, 1>}, {transform_indices = @transform_9, window_bounds = array<i64: 1, 8, 256>}]} {
    %c0_i32 = arith.constant 0 : i32
    %0 = arith.cmpi eq, %arg1, %c0_i32 : i32
    %1 = arith.extui %0 : i1 to i32
    %c0_i32_0 = arith.constant 0 : i32
    %2 = arith.cmpi ne, %1, %c0_i32_0 : i32
    scf.if %2 {
      %c0_i32_2 = arith.constant 0 : i32
      %6 = arith.cmpi eq, %arg2, %c0_i32_2 : i32
      %7 = arith.extui %6 : i1 to i32
      %c0_i32_3 = arith.constant 0 : i32
      %8 = arith.cmpi ne, %7, %c0_i32_3 : i32
      scf.if %8 {
        %cst_32 = arith.constant 0.000000e+00 : f32
        %47 = vector.broadcast %cst_32 : f32 to vector<16x1xf32>
        %c0_33 = arith.constant 0 : index
        %c0_34 = arith.constant 0 : index
        %48 = vector.load %arg13[%c0_33, %c0_34] : memref<16x1xf32, #tpu.memory_space<vmem>>, vector<16x1xf32>
        tpu.vector_store %arg13[%c0_33, %c0_34], %47 {strides = array<i32>} : memref<16x1xf32, #tpu.memory_space<vmem>>, vector<16x1xf32>,
      } else {
      }
      %c0 = arith.constant 0 : index
      %c0_4 = arith.constant 0 : index
      %c0_5 = arith.constant 0 : index
      %9 = vector.load %arg3[%c0, %c0_4, %c0_5] : memref<1x8x256xf32, #tpu.memory_space<vmem>>, vector<1x8x256xf32>
      %10 = vector.shape_cast %9 : vector<1x8x256xf32> to vector<8x256xf32>
      %c0_6 = arith.constant 0 : index
      %c0_7 = arith.constant 0 : index
      %c0_8 = arith.constant 0 : index
      %11 = vector.load %arg4[%c0_6, %c0_7, %c0_8] : memref<1x8x256xf32, #tpu.memory_space<vmem>>, vector<1x8x256xf32>
      %12 = vector.shape_cast %11 : vector<1x8x256xf32> to vector<8x256xf32>
      %c256_i32 = arith.constant 256 : i32
      %13 = arith.muli %arg2, %c256_i32 : i32
      %14 = tpu.assume_multiple %13, 128 : i32
      %c0_9 = arith.constant 0 : index
      %15 = arith.index_cast %14 : i32 to index
      %16 = vector.load %arg15[%c0_9, %15] : memref<8x256xf32, #tpu.memory_space<vmem>>, vector<8x256xf32>
      tpu.vector_store %arg15[%c0_9, %15], %10 {strides = array<i32>} : memref<8x256xf32, #tpu.memory_space<vmem>>, vector<8x256xf32>,
      %c0_10 = arith.constant 0 : index
      %17 = arith.index_cast %14 : i32 to index
      %18 = vector.load %arg16[%c0_10, %17] : memref<8x256xf32, #tpu.memory_space<vmem>>, vector<8x256xf32>
      tpu.vector_store %arg16[%c0_10, %17], %12 {strides = array<i32>} : memref<8x256xf32, #tpu.memory_space<vmem>>, vector<8x256xf32>,
      %c0_11 = arith.constant 0 : index
      %c0_12 = arith.constant 0 : index
      %19 = vector.load %arg5[%c0_11, %c0_12] : memref<4x8xf32, #tpu.memory_space<vmem>>, vector<4x8xf32>
      %cst = arith.constant dense<0.000000e+00> : vector<4x256xf32>
      %20 = tpu.matmul %19, %10, %cst {dimension_numbers = #tpu.dot_dimension_numbers<[1], [0], [0], [1], [0, 0, 1, 1], [], []>} : vector<4x8xf32>, vector<8x256xf32>, vector<4x256xf32> -> vector<4x256xf32>
      %c0_13 = arith.constant 0 : index
      %c0_14 = arith.constant 0 : index
      %21 = vector.load %arg6[%c0_13, %c0_14] : memref<4x8xf32, #tpu.memory_space<vmem>>, vector<4x8xf32>
      %cst_15 = arith.constant dense<0.000000e+00> : vector<4x256xf32>
      %22 = tpu.matmul %21, %12, %cst_15 {dimension_numbers = #tpu.dot_dimension_numbers<[1], [0], [0], [1], [0, 0, 1, 1], [], []>} : vector<4x8xf32>, vector<8x256xf32>, vector<4x256xf32> -> vector<4x256xf32>
      %23 = arith.addf %20, %22 : vector<4x256xf32>
      %c0_16 = arith.constant 0 : index
      %c0_17 = arith.constant 0 : index
      %24 = vector.load %arg7[%c0_16, %c0_17] : memref<4x1xf32, #tpu.memory_space<vmem>>, vector<4x1xf32>
      %25 = vector.broadcast %24 : vector<4x1xf32> to vector<4x256xf32>
      %26 = arith.addf %23, %25 : vector<4x256xf32>
      %cst_18 = arith.constant 0.000000e+00 : f32
      %27 = vector.broadcast %cst_18 : f32 to vector<4x256xf32>
      %28 = arith.maximumf %26, %27 : vector<4x256xf32>
      %c0_19 = arith.constant 0 : index
      %c0_20 = arith.constant 0 : index
      %29 = vector.load %arg8[%c0_19, %c0_20] : memref<16x4xf32, #tpu.memory_space<vmem>>, vector<16x4xf32>
      %cst_21 = arith.constant dense<0.000000e+00> : vector<16x256xf32>
      %30 = tpu.matmul %29, %28, %cst_21 {dimension_numbers = #tpu.dot_dimension_numbers<[1], [0], [0], [1], [0, 0, 1, 1], [], []>} : vector<16x4xf32>, vector<4x256xf32>, vector<16x256xf32> -> vector<16x256xf32>
      %c0_22 = arith.constant 0 : index
      %c0_23 = arith.constant 0 : index
      %31 = vector.load %arg9[%c0_22, %c0_23] : memref<16x1xf32, #tpu.memory_space<vmem>>, vector<16x1xf32>
      %32 = vector.broadcast %31 : vector<16x1xf32> to vector<16x256xf32>
      %33 = arith.addf %30, %32 : vector<16x256xf32>
      %34 = arith.negf %33 : vector<16x256xf32>
      %35 = math.exp %34 : vector<16x256xf32>
      %cst_24 = arith.constant 1.000000e+00 : f32
      %36 = vector.broadcast %cst_24 : f32 to vector<16x256xf32>
      %37 = arith.addf %36, %35 : vector<16x256xf32>
      %38 = arith.divf %36, %37 : vector<16x256xf32>
      %c0_25 = arith.constant 0 : index
      %c0_26 = arith.constant 0 : index
      %39 = vector.load %arg13[%c0_25, %c0_26] : memref<16x1xf32, #tpu.memory_space<vmem>>, vector<16x1xf32>
      %cst_27 = arith.constant dense<0.000000e+00> : vector<16xf32>
      %40 = vector.multi_reduction <add>, %38, %cst_27 [1] : vector<16x256xf32> to vector<16xf32>
      %41 = vector.shape_cast %40 : vector<16xf32> to vector<16x1xf32>
      %42 = arith.addf %39, %41 : vector<16x1xf32>
      %c0_28 = arith.constant 0 : index
      %c0_29 = arith.constant 0 : index
      %43 = vector.load %arg13[%c0_28, %c0_29] : memref<16x1xf32, #tpu.memory_space<vmem>>, vector<16x1xf32>
      tpu.vector_store %arg13[%c0_28, %c0_29], %42 {strides = array<i32>} : memref<16x1xf32, #tpu.memory_space<vmem>>, vector<16x1xf32>,
      %c0_i32_30 = arith.constant 0 : i32
      %44 = arith.cmpi eq, %arg2, %c0_i32_30 : i32
      %45 = arith.extui %44 : i1 to i32
      %c0_i32_31 = arith.constant 0 : i32
      %46 = arith.cmpi ne, %45, %c0_i32_31 : i32
      scf.if %46 {
        %c0_32 = arith.constant 0 : index
        %c0_33 = arith.constant 0 : index
        %47 = vector.load %arg13[%c0_32, %c0_33] : memref<16x1xf32, #tpu.memory_space<vmem>>, vector<16x1xf32>
        %cst_34 = arith.constant 3.906250e-03 : f32
        %48 = vector.broadcast %cst_34 : f32 to vector<16x1xf32>
        %49 = arith.mulf %47, %48 : vector<16x1xf32>
        %c0_35 = arith.constant 0 : index
        %c0_36 = arith.constant 0 : index
        %50 = vector.load %arg10[%c0_35, %c0_36] : memref<8x16xf32, #tpu.memory_space<vmem>>, vector<8x16xf32>
        %cst_37 = arith.constant dense<0.000000e+00> : vector<8x1xf32>
        %51 = tpu.matmul %50, %49, %cst_37 {dimension_numbers = #tpu.dot_dimension_numbers<[1], [0], [0], [1], [0, 0, 1, 1], [], []>} : vector<8x16xf32>, vector<16x1xf32>, vector<8x1xf32> -> vector<8x1xf32>
        %c0_38 = arith.constant 0 : index
        %c0_39 = arith.constant 0 : index
        %52 = vector.load %arg11[%c0_38, %c0_39] : memref<8x1xf32, #tpu.memory_space<vmem>>, vector<8x1xf32>
        %53 = arith.addf %51, %52 : vector<8x1xf32>
        %54 = arith.negf %53 : vector<8x1xf32>
        %55 = math.exp %54 : vector<8x1xf32>
        %cst_40 = arith.constant 1.000000e+00 : f32
        %56 = vector.broadcast %cst_40 : f32 to vector<8x1xf32>
        %57 = arith.addf %56, %55 : vector<8x1xf32>
        %58 = arith.divf %56, %57 : vector<8x1xf32>
        %c0_41 = arith.constant 0 : index
        %c0_42 = arith.constant 0 : index
        %59 = vector.load %arg14[%c0_41, %c0_42] : memref<8x1xf32, #tpu.memory_space<vmem>>, vector<8x1xf32>
        tpu.vector_store %arg14[%c0_41, %c0_42], %58 {strides = array<i32>} : memref<8x1xf32, #tpu.memory_space<vmem>>, vector<8x1xf32>,
      } else {
      }
    } else {
    }
    %c1_i32 = arith.constant 1 : i32
    %3 = arith.cmpi eq, %arg1, %c1_i32 : i32
    %4 = arith.extui %3 : i1 to i32
    %c0_i32_1 = arith.constant 0 : i32
    %5 = arith.cmpi ne, %4, %c0_i32_1 : i32
    scf.if %5 {
      %c0 = arith.constant 0 : index
      %c0_2 = arith.constant 0 : index
      %6 = vector.load %arg14[%c0, %c0_2] : memref<8x1xf32, #tpu.memory_space<vmem>>, vector<8x1xf32>
      %c256_i32 = arith.constant 256 : i32
      %7 = arith.muli %arg2, %c256_i32 : i32
      %8 = tpu.assume_multiple %7, 128 : i32
      %c0_3 = arith.constant 0 : index
      %9 = arith.index_cast %8 : i32 to index
      %10 = vector.load %arg15[%c0_3, %9] : memref<8x256xf32, #tpu.memory_space<vmem>>, vector<8x256xf32>
      %c0_4 = arith.constant 0 : index
      %11 = arith.index_cast %8 : i32 to index
      %12 = vector.load %arg16[%c0_4, %11] : memref<8x256xf32, #tpu.memory_space<vmem>>, vector<8x256xf32>
      %13 = vector.broadcast %6 : vector<8x1xf32> to vector<8x256xf32>
      %14 = arith.mulf %13, %10 : vector<8x256xf32>
      %15 = arith.addf %14, %12 : vector<8x256xf32>
      %c0_5 = arith.constant 0 : index
      %c0_6 = arith.constant 0 : index
      %c0_7 = arith.constant 0 : index
      %16 = vector.load %arg12[%c0_5, %c0_6, %c0_7] : memref<1x8x256xf32, #tpu.memory_space<vmem>>, vector<1x8x256xf32>
      %17 = vector.shape_cast %16 : vector<1x8x256xf32> to vector<8x256xf32>
      %18 = vector.shape_cast %15 : vector<8x256xf32> to vector<1x8x256xf32>
      tpu.vector_store %arg12[%c0_5, %c0_6, %c0_7], %18 {strides = array<i32>} : memref<1x8x256xf32, #tpu.memory_space<vmem>>, vector<1x8x256xf32>,
    } else {
    }
    return
  }
  func.func @transform_0(%arg0: i32, %arg1: i32, %arg2: i32) -> (i32, i32, i32) {
    %c1_i32 = arith.constant 1 : i32
    %0 = arith.subi %c1_i32, %arg1 : i32
    %1 = arith.muli %arg2, %0 : i32
    %c0_i32 = arith.constant 0 : i32
    %c0_i32_0 = arith.constant 0 : i32
    return %arg0, %c0_i32, %1 : i32, i32, i32
  }
  func.func @transform_1(%arg0: i32, %arg1: i32, %arg2: i32) -> (i32, i32, i32) {
    %c1_i32 = arith.constant 1 : i32
    %0 = arith.subi %c1_i32, %arg1 : i32
    %1 = arith.muli %arg2, %0 : i32
    %c0_i32 = arith.constant 0 : i32
    %c0_i32_0 = arith.constant 0 : i32
    return %arg0, %c0_i32, %1 : i32, i32, i32
  }
  func.func @transform_2(%arg0: i32, %arg1: i32, %arg2: i32) -> (i32, i32) {
    %c0_i32 = arith.constant 0 : i32
    %c0_i32_0 = arith.constant 0 : i32
    %c0_i32_1 = arith.constant 0 : i32
    return %c0_i32, %c0_i32_0 : i32, i32
  }
  func.func @transform_3(%arg0: i32, %arg1: i32, %arg2: i32) -> (i32, i32) {
    %c0_i32 = arith.constant 0 : i32
    %c0_i32_0 = arith.constant 0 : i32
    %c0_i32_1 = arith.constant 0 : i32
    return %c0_i32, %c0_i32_0 : i32, i32
  }
  func.func @transform_4(%arg0: i32, %arg1: i32, %arg2: i32) -> (i32, i32) {
    %c0_i32 = arith.constant 0 : i32
    %c0_i32_0 = arith.constant 0 : i32
    %c0_i32_1 = arith.constant 0 : i32
    return %c0_i32, %c0_i32_0 : i32, i32
  }
  func.func @transform_5(%arg0: i32, %arg1: i32, %arg2: i32) -> (i32, i32) {
    %c0_i32 = arith.constant 0 : i32
    %c0_i32_0 = arith.constant 0 : i32
    %c0_i32_1 = arith.constant 0 : i32
    return %c0_i32, %c0_i32_0 : i32, i32
  }
  func.func @transform_6(%arg0: i32, %arg1: i32, %arg2: i32) -> (i32, i32) {
    %c0_i32 = arith.constant 0 : i32
    %c0_i32_0 = arith.constant 0 : i32
    %c0_i32_1 = arith.constant 0 : i32
    return %c0_i32, %c0_i32_0 : i32, i32
  }
  func.func @transform_7(%arg0: i32, %arg1: i32, %arg2: i32) -> (i32, i32) {
    %c0_i32 = arith.constant 0 : i32
    %c0_i32_0 = arith.constant 0 : i32
    %c0_i32_1 = arith.constant 0 : i32
    return %c0_i32, %c0_i32_0 : i32, i32
  }
  func.func @transform_8(%arg0: i32, %arg1: i32, %arg2: i32) -> (i32, i32) {
    %c0_i32 = arith.constant 0 : i32
    %c0_i32_0 = arith.constant 0 : i32
    %c0_i32_1 = arith.constant 0 : i32
    return %c0_i32, %c0_i32_0 : i32, i32
  }
  func.func @transform_9(%arg0: i32, %arg1: i32, %arg2: i32) -> (i32, i32, i32) {
    %0 = arith.muli %arg2, %arg1 : i32
    %c0_i32 = arith.constant 0 : i32
    %c0_i32_0 = arith.constant 0 : i32
    return %arg0, %c0_i32, %0 : i32, i32, i32
  }
}

</mosaic_0001>

<bundles_post_ra>
// kernel: tpu_custom_call.1
= control target key start
LH: loop header
LB: loop body
LE: loop exit
PB: predicated region body
PF: predicated region fallthrough
CT: control target
= control target key end

     0   :  { %s1596_s0 = inlined_call_operand.vmem [shape: f32[2,8,256], index: 0, kind: input, shape index: {}]   ;;  %s1597_s1 = inlined_call_operand.hbm [shape: f32[2,8,256], index: 1, kind: input, shape index: {}]   ;;  %s1598_s2 = inlined_call_operand.vmem [shape: f32[4,8], index: 2, kind: input, shape index: {}]   ;;  %s1599_s3 = inlined_call_operand.vmem [shape: f32[4,8], index: 3, kind: input, shape index: {}]   ;;  %s1600_s4 = inlined_call_operand.vmem [shape: f32[4,1], index: 4, kind: input, shape index: {}]   ;;  %s1601_s5 = inlined_call_operand.vmem [shape: f32[16,4], index: 5, kind: input, shape index: {}]   ;;  %s1602_s6 = inlined_call_operand.vmem [shape: f32[16,1], index: 6, kind: input, shape index: {}]   ;;  %s1603_s7 = inlined_call_operand.vmem [shape: f32[8,16], index: 7, kind: input, shape index: {}]   ;;  %s1604_s8 = inlined_call_operand.vmem [shape: f32[8,1], index: 8, kind: input, shape index: {}]   ;;  %s1605_s9 = inlined_call_operand.hbm [shape: f32[2,8,256], index: 9, kind: output, shape index: {}]  }
   0x1   :  { %1610 = sst [smem:[#allocation16_spill]] %s1597_s1 }
   0x2   :  { %14 = vsyncpa [#allocation7], 0 }
   0x3   :  { %16 = vsyncpa [#allocation7 + $0x1], 0 }
   0x4   :  { %17 = vsyncpa [#allocation8], 0 }
   0x5   :  { %19 = vsyncpa [#allocation8 + $0x1], 0  ;;  %s1359_s30 = smov 0   ;;  %s1361_s10 = smov 0  }
   0x6   :  { %s1363_s11 = smov 0   ;;  %s1365_s12 = smov 0  }
   0x7   :  { %s1367_s13 = smov 0   ;;  %s1369_s14 = smov 0  }
   0x8   :  { %s1371_s15 = smov 0   ;;  %s1373_s16 = smov 0  }
   0x9 LB: > { %1611 = sst [smem:[#allocation12_spill]] %s1272_s30  ;;  %s1017_s17 = sadd.s32 4294967295, %s1300_s16   ;;  %s1300_s16 = sphi %s1373_s16, %s25_s16   ;;  %s1296_s15 = sphi %s1371_s15, %s1633_s15   ;;  %s1292_s14 = sphi %s1369_s14, %s1627_s14   ;;  %s1288_s13 = sphi %s1367_s13, %s1632_s13   ;;  %s1284_s12 = sphi %s1365_s12, %s1626_s12   ;;  %s1280_s11 = sphi %s1363_s11, %s1631_s11   ;;  %s1276_s10 = sphi %s1361_s10, %s1630_s10   ;;  %s1272_s30 = sphi %s1359_s30, %s1629_s30  }
   0xa   : > { %1612 = sst [smem:[#allocation13_spill]] %s1292_s14  ;;  %s1018_s18 = sadd.s32 4294967294, %s1300_s16  }
   0xb   : > { %s40_s19 = sadd.s32 1, %s1292_s14  ;;  %s44_s20 = sadd.s32 1, %s1296_s15 }
   0xc   : > { %p42_p0 = scmp.ge.s32.totalorder %s40_s19, 2  ;;  %s89_s21 = sadd.s32 1, %s1280_s11 }
   0xd   : > { %p96_p1 = scmp.ne.s32.totalorder %s1280_s11, %s1276_s10  ;;  %p97_p2 = scmp.eq.s32.totalorder %s1300_s16, 0 }
   0xe   : > { %s1635_s19 = smov (%p42_p0, %s40_s19), 0  ;;  %s1637_s20 = smov (!%p42_p0, %s44_s20), %s1296_s15 }
   0xf   : > { %1613 = sst [smem:[#allocation14_spill]] %s1635_s19  ;;  %p1410_p3 = por %p97_p2, %p96_p1 }
  0x10   : > { %p102_p4 = scmp.ne.s32.totalorder %s1276_s10, %s1272_s30  ;;  %p46_p5 = scmp.ge.s32.totalorder %s1637_s20, 2 }
  0x11   : > { %p103_p6 = scmp.eq.s32.totalorder %s1017_s17, 0  ;;  %p277_p7 = scmp.eq.s32.totalorder %s1017_s17, 3 }
  0x12   : > { %p283_p8 = scmp.eq.s32.totalorder %s1018_s18, 3  ;;  %s1639_s20 = smov (%p46_p5, %s1637_s20), 0 }
  0x13   : > { %1615 = sst [smem:[#allocation15_spill]] %s1639_s20  ;;  %p1418_p9 = por %p103_p6, %p102_p4 }
  0x14   : > { %p1422_p10 = por %p277_p7, %p96_p1  ;;  %s84_s25 = ssub.s32 %s1296_s15, %s1639_s20 }
  0x15   : > { %p1428_p11 = por %p283_p8, %p102_p4  ;;  %p87_p12 = scmp.eq.s32.totalorder %s84_s25, 0 }
  0x16   : > { %s1617_s24 = scalar_select %p1422_p10, 1, 0 }
  0x17   : > { %s1618_s26 = scalar_select %p1428_p11, 1, 0 }
  0x18   : > { %p1078_p13 = scmp.lt.s32.totalorder %s1300_s16, 4  ;;  %s341_s27 = sand.u32 1, %s1280_s11  }
  0x19   : > { %s1435_s28 = scalar_select %p87_p12, %s1280_s11, %s89_s21  }
  0x1a   : > { %s1021_s29 = sshll.u32 %s341_s27, 4  ;;  %s1048_s17 = sshll.u32 %s1296_s15, 8 }
  0x1b   : > { %s1619_s1 = sld [smem:[#allocation16_spill]]  ;;  %s345_s20 = scalar_lea.vmem [#allocation6], %s1021_s29 }
  0x1c   : > { %s357_s30 = sshll.u32 %s345_s20, 4  ;;  %p1447_p0 = pnand %p1078_p13, %p1410_p3  ;;  %s1443_s30 = int_to_ptr.vmem [resolvable:$true] %s357_s30 }
  0x1d   : > { %s342_s19 = scalar_lea.sflag [#allocation7], %s341_s27 }
  0x1e   : > { %p1174_p5 = pneg %p1447_p0 }
  0x21   : > { %s1441_s14 = scalar_lea.hbm %s1619_s1, %s1048_s17  ;;  %s1177_s22 = scalar_lea.hbm %s1619_s1, 512 }
  0x22   : > { %s1172_s21 = scalar_lea.hbm %s1441_s14, 256  ;;  %p1178_p3 = scmp.lt.u32.totalorder %s1441_s14, %s1619_s1 }
  0x23   : > { %p1173_p4 = scmp.ne.s32.totalorder %s1441_s14, %s1172_s21  ;;  %p1179_p8 = scmp.lt.u32.totalorder %s1177_s22, %s1172_s21 }
  0x24   : > { %p1181_p13 = scmp.lt.u32.totalorder %s1172_s21, %s1441_s14 }
  0x25   : > { %p1175_p6 = pnand %p1174_p5, %p1173_p4  ;;  %p1180_p12 = por %p1179_p8, %p1178_p3 }
  0x27   : > { %p1176_p7 = pneg %p1175_p6  ;;  %p1182_p1 = por %p1181_p13, %p1180_p12 }
  0x29   : > { %p1183_p2 = pnand %p1182_p1, %p1176_p7 }
  0x2b   : > { %1186 = shalt.err (!%p1183_p2)
}
  0x2c   : > { %s1187_s27 = scalar_lea.vmem %s1443_s30, 256  ;;  %s1302_s20 = smov [#allocation6]  }
  0x2d   : > { %p1188_p4 = scmp.ne.s32.totalorder %s1443_s30, %s1187_s27  ;;  %s1192_s29 = sshll.u32 %s1302_s20, 4  ;;  %s1193_s29 = int_to_ptr.vmem [resolvable:$false] %s1192_s29 }
  0x2e   : > { %s1194_s17 = scalar_lea.vmem %s1193_s29, 512  ;;  %p1195_p10 = scmp.lt.s32.totalorder %s1443_s30, %s1193_s29 }
  0x2f   : > { %p1190_p6 = pnand %p1188_p4, %p1174_p5  ;;  %p1196_p3 = scmp.lt.s32.totalorder %s1194_s17, %s1187_s27 }
  0x31   : > { %p1191_p11 = pneg %p1190_p6  ;;  %p1197_p8 = por %p1196_p3, %p1195_p10 }
  0x33   : > { %p1198_p12 = pnand %p1197_p8, %p1191_p11 }
  0x35   : > { %1201 = shalt.err (!%p1198_p12)
}
  0x36   : > { %1073 = dma.hbm_to_vmem [thread:$0]  (!%p1447_p0), %s1441_s14, 256, %s1443_s30, %s342_s19  }
  0x37   : > { %p1621_p1 = scmp.lt.s32.totalorder %s1300_s16, 5  ;;  %p1622_p2 = scmp.ge.s32.totalorder %s1300_s16, 1 }
  0x39   : > { %p363_p5 = pnand %p1622_p2, %p1621_p1 }
  0x3a   : > { %s1483_s21 = sand.u32 (!%p363_p5), 1, %s1276_s10  }
  0x3b   : > { %366 = sbr.rel (%p363_p5) target bundleno = 1112 (0x458), region = 56  ;;  %s1025_s22 = sshll.u32 (!%p363_p5), %s1483_s21, 4 }
  0x3c   : > { %s369_s18 = scalar_lea.sflag (!%p363_p5), [#allocation7], %s1483_s21  ;;  %s372_s27 = scalar_lea.vmem (!%p363_p5), [#allocation6], %s1025_s22 }
  0x42   : > { %1263 = dma.done.wait (%p1418_p9), %s369_s18, 256  }
  0x43   : > { %1265 = vsyncadd (%p1418_p9), %s369_s18, 4294967040  ;;  %p421_p10 = scmp.lt.s32.totalorder %s1288_s13, 1  ;;  %s1496_s29 = scalar_lea.vmem [#allocation9], %s1025_s22 }
  0x44   : > { %p1029_p11 = scmp.ne.s32.totalorder %s1284_s12, 0 }
  0x45   : > { %s422_s30 = scalar_select %p421_p10, %s1288_s13, 1 }
  0x46   : > { %440 = sbr.rel (%p1029_p11) target bundleno = 947 (0x3b3), region = 64  ;;  %v451_v0 = vld [vmem:[%s372_s27 + $0x8] sm:$0xff] (!%p1029_p11)  ;;  %v450_v1 = vld [vmem:[%s372_s27] sm:$0xff] (!%p1029_p11)  ;;  %vm465_vm0 = vcmask (!%p1029_p11), 64512   ;;  %v1303_v3 = vmov (!%p1029_p11), 0.0   ;;  %v1304_v6 = vmov (!%p1029_p11), 0  }
  0x47   : > { %s1049_s14 = sshll.u32 %s422_s30, 4  ;;  %v464_v2 = vld [vmem:[%s1599_s3] sm:$0xf] (!%p1029_p11)  ;;  %462 = vst [vmem:[#allocation5 + $0x8] sm:$0xff] (!%p1029_p11), %v451_v0  ;;  %469 = vmatprep.subr.mxu0 (!%p1029_p11), %v451_v0  ;;  %461 = vst [vmem:[#allocation5] sm:$0xff] (!%p1029_p11), %v450_v1  ;;  %533 = vmatprep.mubr.f32.mxu0 (!%p1029_p11), %v1303_v3  ;;  %v627_v10 = vld [vmem:[%s1602_s6 + $0x8] sm:$0xff] (!%p1029_p11) }
  0x48   : > { %s428_s20 = scalar_lea.vmem %s1596_s0, %s1049_s14  ;;  %470 = vmatpush1.msra.mxu0 (!%p1029_p11), %v450_v1  ;;  %1149 = vset.pattern.permute.xlu0 (!%p1029_p11), %v1304_v6  ;;  %v614_v7 = vld [vmem:[%s1600_s4] sm:$0xf] (!%p1029_p11)  ;;  %vm645_vm1 = vcmask (!%p1029_p11), 1043456   ;;  %vm638_vm2 = vcmask (!%p1029_p11), 31744   ;;  %v625_v19 = vld [vmem:[%s1601_s5 + $0x8] sm:$0xff] (!%p1029_p11)  ;;  %vm445_vm3 = vcmask (!%p1029_p11), 7168  }
  0x49   : > { %v449_v4 = vld [vmem:[%s428_s20 + $0x8] sm:$0xff] (!%p1029_p11)  ;;  %v448_v5 = vld [vmem:[%s428_s20] sm:$0xff] (!%p1029_p11)  ;;  %1030 = vmatmul.mubr.msk.f32.vlgmr.msra.gmra.mrb[0].mxu0 (!%p1029_p11), %vm465_vm0, %v464_v2  ;;  %617 = vperm.xlu0 (!%p1029_p11), %1149, %v614_v7   ;;  %446 = vst.msk [vmem:[#allocation2] sm:$0xff] (!%p1029_p11), %vm445_vm3, %v1303_v3  ;;  %447 = vst.msk [vmem:[#allocation2 + $0x8] sm:$0xff] (!%p1029_p11), %vm445_vm3, %v1303_v3  ;;  %v1305_v48 = vmov (!%p1029_p11), 0.0|0.0   ;;  %vm1306_vm4 = vmmov (!%p1029_p11), 0  }
  0x4a   : > { %458 = vst [vmem:[#allocation4 + $0x8] sm:$0xff] (!%p1029_p11), %v449_v4  ;;  %457 = vst [vmem:[#allocation4] sm:$0xff] (!%p1029_p11), %v448_v5  ;;  %543 = vmatprep.subr.mxu0 (!%p1029_p11), %v449_v4  ;;  %607 = vmatprep.mubr.f32.mxu0 (!%p1029_p11), %v1303_v3  ;;  %v626_v8 = vld [vmem:[%s1602_s6] sm:$0xff] (!%p1029_p11)  ;;  %vm775_vm5 = vcmask (!%p1029_p11), 130048  }
  0x4b   : > { %544 = vmatpush1.msra.mxu0 (!%p1029_p11), %v448_v5  ;;  %716 = vmatprep.mubr.f32.mxu1 (!%p1029_p11), %v1303_v3  ;;  %v463_v9 = vld [vmem:[%s1598_s2] sm:$0xf] (!%p1029_p11) }
  0x4c   : > { %1150 = vset.pattern.permute.xlu1 (!%p1029_p11), %v1304_v6  ;;  %v624_v18 = vld [vmem:[%s1601_s5] sm:$0xff] (!%p1029_p11)  ;;  %1061 = vmatprep.subr.bf16.mxu0 (!%p1029_p11), %v1305_v48 }
  0x4d   : > { %630 = vperm.xlu0 %1149, %v626_v8   ;;  %635 = vperm.xlu1 %1150, %v627_v10   ;;  %v773_v60 = vld [vmem:[%s1603_s7] sm:$0xff] }
  0x4e   : > { %v774_v61 = vld [vmem:[%s1604_s8] sm:$0xff] }
  0x50   : > { %v753_v49 = vld [vmem:[#allocation2] sm:$0xff]  ;;  %v754_v52 = vld [vmem:[#allocation2 + $0x8] sm:$0xff] }
  0x51   : > { %1031 = vmatmul.mubr.msk.f32.vlgmr.msra.gmra.mrb[0].mxu0 %vm465_vm0, %v463_v9 }
  0x52   : > { %1058 = vmatprep.mubr.msk.f32.mxu0 %vm1306_vm4, %v1303_v3 }
  0xc8   : > { %v618_v11 = vpop.permute.xlu0 %617 }
  0xcc   : > { %v631_v20 = vpop.permute.xlu0 %630  ;;  %v636_v25 = vpop.permute.xlu1 %635 }
 0x124   : > { %v609_v12 = vpop.f32.mrb[0].mxu0 }
 0x125   : > { %v620_v13 = vadd.f32 %v618_v11, %v609_v12  ;;  %v611_v14 = vpop.f32.mrb[1].mxu0 }
 0x126   : > { %v621_v15 = vadd.f32 %v618_v11, %v611_v14 }
 0x127   : > { %v622_v17 = vmax.f32 %v620_v13, 0.0 }
 0x128   : > { %v623_v16 = vmax.f32 %v621_v15, 0.0 }
 0x12a   : > { %1032 = vmatprep.subr.msk.mxu1 %vm645_vm1, %v623_v16 }
 0x12b   : > { %1033 = vmatpush1.msk.msra.mxu1 %vm645_vm1, %v622_v17 }
 0x12c   : > { %1034 = vmatmul.mubr.msk.f32.vlgmr.msra.gmra.mrb[0].mxu1 %vm638_vm2, %v624_v18 }
 0x12d   : > { %722 = vmatprep.mubr.f32.mxu1 %v1303_v3 }
 0x130   : > { %1035 = vmatmul.mubr.msk.f32.gmra.mrb[2].mxu1 %vm638_vm2, %v625_v19 }
 0x1ff   : > { %v718_v21 = vpop.f32.mrb[0].mxu1 }
 0x200   : > { %v719_v22 = vadd.f32 %v718_v21, %v631_v20  ;;  %v720_v23 = vpop.f32.mrb[1].mxu1 }
 0x201   : > { %v721_v24 = vadd.f32 %v720_v23, %v631_v20 }
 0x202   : > { %v1036_v26 = vmul.f32 -1.442695, %v719_v22 }
 0x203   : > { %v1037_v27 = vmul.f32 -1.442695, %v721_v24  ;;  %v724_v28 = vpop.f32.mrb[2].mxu1 }
 0x204   : > { %1151 = vpow2.f32 %v1036_v26  ;;  %v725_v29 = vadd.f32 %v724_v28, %v636_v25  ;;  %v726_v30 = vpop.f32.mrb[3].mxu1 }
 0x205   : > { %1153 = vpow2.f32 %v1037_v27  ;;  %v727_v31 = vadd.f32 %v726_v30, %v636_v25 }
 0x206   : > { %v1038_v32 = vmul.f32 -1.442695, %v725_v29 }
 0x207   : > { %v1039_v33 = vmul.f32 -1.442695, %v727_v31 }
 0x208   : > { %1155 = vpow2.f32 %v1038_v32 }
 0x209   : > { %1157 = vpow2.f32 %v1039_v33 }
 0x20e   : > { %v1152_v34 = vpop.eup %1151 }
 0x20f   : > { %v1154_v35 = vpop.eup %1153  ;;  %v741_v36 = vadd.f32 1.0, %v1152_v34 }
 0x210   : > { %v742_v37 = vadd.f32 1.0, %v1154_v35 }
 0x211   : > { %1159 = vrcp.f32 %v741_v36 }
 0x212   : > { %v1156_v38 = vpop.eup %1155  ;;  %1161 = vrcp.f32 %v742_v37 }
 0x213   : > { %v1158_v39 = vpop.eup %1157  ;;  %v743_v40 = vadd.f32 1.0, %v1156_v38 }
 0x214   : > { %v744_v41 = vadd.f32 1.0, %v1158_v39 }
 0x215   : > { %1163 = vrcp.f32 %v743_v40 }
 0x216   : > { %1165 = vrcp.f32 %v744_v41 }
 0x21b   : > { %v1160_v42 = vpop.eup %1159 }
 0x21c   : > { %v1162_v43 = vpop.eup %1161 }
 0x21d   : > { %v755_v44 = vadd.f32 %v1162_v43, %v1160_v42 }
 0x21f   : > { %v1164_v45 = vpop.eup %1163  ;;  %756 = vadd.xlane.f32.xlu1 %v755_v44 }
 0x220   : > { %v1166_v46 = vpop.eup %1165 }
 0x221   : > { %v758_v47 = vadd.f32 %v1166_v46, %v1164_v45 }
 0x223   : > { %759 = vadd.xlane.f32.xlu0 %v758_v47 }
 0x2ac   : > { %v757_v50 = vpop.xlane.xlu1 %756 }
 0x2ad   : > { %v761_v51 = vadd.f32 %v757_v50, %v753_v49 }
 0x2af   : > { %764 = vst.msk [vmem:[#allocation2] sm:$0xff] %vm445_vm3, %v761_v51 }
 0x2b0   : > { %v760_v53 = vpop.xlane.xlu0 %759 }
 0x2b1   : > { %v762_v54 = vadd.f32 %v760_v53, %v754_v52 }
 0x2b3   : > { %765 = vst.msk [vmem:[#allocation2 + $0x8] sm:$0xff] %vm445_vm3, %v762_v54 }
 0x2b6   : > { %v769_v55 = vld [vmem:[#allocation2] sm:$0xff] }
 0x2b7   : > { %v771_v57 = vmul.f32 0.00390625, %v769_v55 }
 0x2ba   : > { %v770_v56 = vld [vmem:[#allocation2 + $0x8] sm:$0xff] }
 0x2bb   : > { %v772_v58 = vmul.f32 0.00390625, %v770_v56 }
 0x2bd   : > { %v1062_v59 = vpack.c.bf16 %v772_v58, %v771_v57 }
 0x2bf   : > { %1063 = vmatpush3.bf16.msra.mxu0 %v1062_v59 }
 0x2c2   : > { %1059 = vmatmul.mubr.msk.f32.vlgmr.msra.gmra.mrb[2].mxu0 %vm775_vm5, %v773_v60 }
 0x395   : > { %v845_v62 = vpop.f32.mrb[2].mxu0 }
 0x396   : > { %v846_v63 = vadd.f32 %v845_v62, %v774_v61  ;;  %v1060_v0 = vpop.f32.mrb[3].mxu0 }
 0x398   : > { %v1041_v1 = vmul.f32 -1.442695, %v846_v63 }
 0x39a   : > { %1167 = vpow2.f32 %v1041_v1 }
 0x3a4   : > { %v1168_v2 = vpop.eup %1167 }
 0x3a5   : > { %v852_v3 = vadd.f32 1.0, %v1168_v2 }
 0x3a7   : > { %1169 = vrcp.f32 %v852_v3 }
 0x3b1   : > { %v1170_v4 = vpop.eup %1169 }
 0x3b2   : > { %855 = vst.msk [vmem:[#allocation3] sm:$0xff] %vm445_vm3, %v1170_v4 }
 0x3b3 PF: > { %p1042_p9 = scmp.ne.s32.totalorder %s1284_s12, 1 }
 0x3b4   : > { %v1307_v6 = vmov (!%p1042_p9), 0   ;;  %v870_v9 = vld [vmem:[#allocation5] sm:$0xff] (!%p1042_p9)  ;;  %v871_v10 = vld [vmem:[#allocation5 + $0x8] sm:$0xff] (!%p1042_p9) }
 0x3b5   : > { %859 = sbr.rel (%p1042_p9) target bundleno = 1087 (0x43f), region = 76  ;;  %1171 = vset.pattern.permute.xlu0 (!%p1042_p9), %v1307_v6 }
 0x3b7   : > { %v866_v7 = vld [vmem:[#allocation4] sm:$0xff] (!%p1042_p9)  ;;  %v867_v8 = vld [vmem:[#allocation4 + $0x8] sm:$0xff] (!%p1042_p9) }
 0x3b9   : > { %v860_v5 = vld [vmem:[#allocation3] sm:$0xff] (!%p1042_p9) }
 0x3ba   : > { %874 = vperm.xlu0 (!%p1042_p9), %1171, %v860_v5  }
 0x439   : > { %v875_v11 = vpop.permute.xlu0 %874 }
 0x43a   : > { %v877_v12 = vmul.f32 %v875_v11, %v866_v7  ;;  %v878_v13 = vmul.f32 %v875_v11, %v867_v8 }
 0x43c   : > { %v879_v14 = vadd.f32 %v877_v12, %v870_v9  ;;  %v880_v15 = vadd.f32 %v878_v13, %v871_v10 }
 0x43e   : > { %881 = vst [vmem:[%s1496_s29] sm:$0xff] %v879_v14  ;;  %882 = vst [vmem:[%s1496_s29 + $0x8] sm:$0xff] %v880_v15 }
 0x43f PF: > { %s1050_s12 = sshll.u32 %s1288_s13, 8  ;;  %s901_s19 = sshll.u32 %s1496_s29, 4  ;;  %s902_s19 = int_to_ptr.vmem [resolvable:$true] %s901_s19 }
 0x440   : > { %s1547_s25 = scalar_lea.hbm %s1605_s9, %s1050_s12  ;;  %s884_s20 = scalar_lea.sflag [#allocation8], %s1483_s21 }
 0x441   : > { %s1202_s17 = scalar_lea.vmem %s902_s19, 256  ;;  %p1623_p7 = scmp.ne.s32.totalorder %s1617_s24, 0 }
 0x442   : > { %p1203_p0 = scmp.ne.s32.totalorder %s902_s19, %s1202_s17  ;;  %s1308_s23 = smov [#allocation9]  }
 0x443   : > { %s1206_s22 = sshll.u32 %s1308_s23, 4  ;;  %s1207_s22 = int_to_ptr.vmem [resolvable:$false] %s1206_s22 }
 0x444   : > { %p1204_p13 = pnand %p1203_p0, %p1623_p7  ;;  %s1208_s1 = scalar_lea.vmem %s1207_s22, 512 }
 0x445   : > { %p1209_p6 = scmp.lt.s32.totalorder %s902_s19, %s1207_s22  ;;  %p1210_p3 = scmp.lt.s32.totalorder %s1208_s1, %s1202_s17 }
 0x446   : > { %p1205_p4 = pneg %p1204_p13 }
 0x447   : > { %p1211_p8 = por %p1210_p3, %p1209_p6 }
 0x449   : > { %p1212_p12 = pnand %p1211_p8, %p1205_p4 }
 0x44b   : > { %1215 = shalt.err (!%p1212_p12)
}
 0x44c   : > { %s1216_s13 = scalar_lea.hbm %s1547_s25, 256  ;;  %s1220_s18 = scalar_lea.hbm %s1605_s9, 512 }
 0x44d   : > { %p1217_p1 = scmp.ne.s32.totalorder %s1547_s25, %s1216_s13  ;;  %p1221_p10 = scmp.lt.u32.totalorder %s1547_s25, %s1605_s9 }
 0x44e   : > { %p1222_p11 = scmp.lt.u32.totalorder %s1220_s18, %s1216_s13  ;;  %p1224_p0 = scmp.lt.u32.totalorder %s1216_s13, %s1547_s25 }
 0x44f   : > { %p1218_p2 = pnand %p1217_p1, %p1623_p7 }
 0x450   : > { %p1223_p9 = por %p1222_p11, %p1221_p10 }
 0x451   : > { %p1219_p5 = pneg %p1218_p2 }
 0x452   : > { %p1225_p13 = por %p1224_p0, %p1223_p9 }
 0x454   : > { %p1226_p4 = pnand %p1225_p13, %p1219_p5 }
 0x456   : > { %1229 = shalt.err (!%p1226_p4)
}
 0x457   : > { %1068 = dma.vmem_to_hbm [thread:$0]  (%p1623_p7), %s902_s19, 256, %s1547_s25, %s884_s20  }
 0x458 PF: > { %s1624_s30 = sld [smem:[#allocation12_spill]]  ;;  %p1079_p6 = scmp.ge.s32.totalorder %s1300_s16, 2 }
 0x459   : > { %p1625_p3 = scmp.ne.s32.totalorder %s1618_s26, 0 }
 0x45b   : > { %p1075_p8 = pnand %p1079_p6, %p1625_p3 }
 0x45e   : > { %s913_s14 = sand.u32 1, %s1624_s30  }
 0x45f   : > { %s914_s17 = scalar_lea.sflag [#allocation8], %s913_s14 }
 0x460   : > { %1267 = dma.done.wait (!%p1075_p8), %s914_s17, 256  }
 0x461   : > { %1269 = vsyncadd (!%p1075_p8), %s914_s17, 4294967040  ;;  %s25_s16 = sadd.s32 1, %s1300_s16   ;;  %s1626_s12 = sld [smem:[#allocation13_spill]] }
 0x462   : > { %p22_p12 = scmp.ge.s32.totalorder %s25_s16, 6   ;;  %s1627_s14 = sld [smem:[#allocation14_spill]] }
 0x463   : > { %s1628_s24 = sld [smem:[#allocation15_spill]]  ;;  %s1629_s30 = smov %s1276_s10 }
 0x464   : > { %s1630_s10 = smov %s1280_s11  ;;  %s1631_s11 = smov %s1435_s28 }
 0x465   : > { %s1632_s13 = smov %s1296_s15  ;;  %24 = sbr.rel (!%p22_p12) target bundleno = 9 (0x9), region = 124 }
 0x469   : > { %s1633_s15 = smov %s1628_s24 }
 0x46c   :  { %919 = vsyncpa [#allocation7], 1 }
 0x46d   :  { %921 = vsyncpa [#allocation7 + $0x1], 1 }
 0x46e   :  { %922 = vsyncpa [#allocation8], 1 }
 0x46f   :  { %924 = vsyncpa [#allocation8 + $0x1], 1 }

</bundles_post_ra>
